<compile_context>
chip_gen: v6e
topology: v6e:2x2x1
jax: 0.10.0
libtpu: 0.0.40
codegen_flags: <defaults>
</compile_context>

<pallas_src>
import functools

import jax
import jax.numpy as jnp
from jax.experimental import pallas as pl
from jax.experimental.pallas import tpu as pltpu


def _round_up(v: int, m: int) -> int:
    return (v + m - 1) // m * m


def _rcv_linear_kernel(b_ref, c_ref, wr_ref, wi_ref, out_ref, acc_ref):
    k = pl.program_id(2)

    @pl.when(k == 0)
    def _init():
        acc_ref[...] = jnp.zeros_like(acc_ref)

    # AC - BD = b @ Wr^T - c @ Wi^T  (weights pre-transposed to (K, N)).
    acc_ref[...] += jnp.dot(b_ref[...], wr_ref[...],
                            preferred_element_type=jnp.float32)
    acc_ref[...] -= jnp.dot(c_ref[...], wi_ref[...],
                            preferred_element_type=jnp.float32)

    @pl.when(k == pl.num_programs(2) - 1)
    def _finalize():
        res = acc_ref[...].astype(out_ref.dtype)
        # The PyTorch module stacks AC_sub_BD twice along dim -2; AD + BC is
        # computed there but never used in the returned tensor, so we skip it.
        out_ref[:, 0, :] = res
        out_ref[:, 1, :] = res


@functools.partial(jax.jit, static_argnames=("tm", "tn", "tk"))
def rcv_linear(x, w_real, w_imag, *, tm=128, tn=128, tk=256):
    """x: (B, 2, in_features) f32; w_real / w_imag: (out_features, in_features) f32."""
    B, two, K = x.shape
    assert two == 2, "expected input shaped (batch, 2, in_features)"
    N, K2 = w_real.shape
    assert K2 == K and w_imag.shape == (N, K)
    # TODO(synk): the PyTorch forward calls .squeeze(), which changes rank when
    # batch == 1; this wrapper keeps the batched (B, 2, out) layout (B >= 2).

    # Clamp tile sizes to the hardware-aligned problem size.
    tm = min(tm, _round_up(B, 8))
    tn = min(tn, _round_up(N, 128))
    tk = min(tk, _round_up(K, 128))

    bp = _round_up(B, tm)
    np_ = _round_up(N, tn)
    kp = _round_up(K, tk)

    # Zero-pad to tile multiples (zero K-padding contributes nothing to the dot).
    xp = jnp.pad(x.astype(jnp.float32), ((0, bp - B), (0, 0), (0, kp - K)))
    # Free row-major reshape: real part -> columns [0, kp), imag -> [kp, 2*kp).
    x2 = xp.reshape(bp, 2 * kp)

    wr_t = jnp.pad(w_real.astype(jnp.float32), ((0, np_ - N), (0, kp - K))).T  # (kp, np_)
    wi_t = jnp.pad(w_imag.astype(jnp.float32), ((0, np_ - N), (0, kp - K))).T  # (kp, np_)

    kb = kp // tk
    grid = (bp // tm, np_ // tn, kb)

    out = pl.pallas_call(
        _rcv_linear_kernel,
        out_shape=jax.ShapeDtypeStruct((bp, 2, np_), jnp.float32),
        grid=grid,
        in_specs=[
            # b = x[:, 0, :]  -> column blocks [0, kb) of the flattened input
            pl.BlockSpec((tm, tk), lambda i, j, k: (i, k)),
            # c = x[:, 1, :]  -> column blocks [kb, 2*kb)
            pl.BlockSpec((tm, tk), lambda i, j, k: (i, k + kb)),
            # Wr^T, Wi^T tiles over (K, N)
            pl.BlockSpec((tk, tn), lambda i, j, k: (k, j)),
            pl.BlockSpec((tk, tn), lambda i, j, k: (k, j)),
        ],
        out_specs=pl.BlockSpec((tm, 2, tn), lambda i, j, k: (i, 0, j)),
        scratch_shapes=[pltpu.VMEM((tm, tn), jnp.float32)],
        compiler_params=pltpu.CompilerParams(
            dimension_semantics=("parallel", "parallel", "arbitrary"),
            vmem_limit_bytes=32 * 1024 * 1024,
        ),
    )(x2, x2, wr_t, wi_t)

    return out[:B, :, :N]


def _reference(x, w_real, w_imag):
    b = x[:, 0, :]
    c = x[:, 1, :]
    ac_sub_bd = b @ w_real.T - c @ w_imag.T
    return jnp.stack((ac_sub_bd, ac_sub_bd), axis=-2)


def _assert_close(a, b, tol):
    err = jnp.max(jnp.abs(a - b))
    scale = jnp.maximum(1.0, jnp.max(jnp.abs(b)))
    assert err <= tol * scale, (float(err), float(scale))


if __name__ == "__main__":
    key = jax.random.PRNGKey(0)
    k1, k2, k3, k4 = jax.random.split(key, 4)

    # Small shapes consistent with the module: batch=2, in_features=32, out_features=64.
    B, IN, OUT = 2, 32, 64
    x = jax.random.normal(k1, (B, 2, IN), dtype=jnp.float32)
    w_real = 0.1 * jax.random.normal(k2, (OUT, IN), dtype=jnp.float32)
    w_imag = 0.1 * jax.random.normal(k3, (OUT, IN), dtype=jnp.float32)

    out = jax.block_until_ready(rcv_linear(x, w_real, w_imag))
    assert out.shape == (B, 2, OUT) and out.dtype == jnp.float32
    _assert_close(out, _reference(x, w_real, w_imag), tol=2e-2)

    # Second check that exercises a real multi-tile grid (M, N tiling and the
    # K-carried accumulator): grid = (2, 2, 2).
    B2, IN2, OUT2 = 256, 512, 256
    kx, kwr, kwi = jax.random.split(k4, 3)
    x_big = jax.random.normal(kx, (B2, 2, IN2), dtype=jnp.float32)
    wr_big = 0.05 * jax.random.normal(kwr, (OUT2, IN2), dtype=jnp.float32)
    wi_big = 0.05 * jax.random.normal(kwi, (OUT2, IN2), dtype=jnp.float32)
    out_big = jax.block_until_ready(rcv_linear(x_big, wr_big, wi_big))
    _assert_close(out_big, _reference(x_big, wr_big, wi_big), tol=2e-2)

    print("KERNEL_OK")
</pallas_src>

<mosaic_0001>
module attributes {stable_mosaic.version = 11 : i64} {
  func.func @_rcv_linear_kernel(%arg0: i32, %arg1: i32, %arg2: i32, %arg3: memref<8x128xf32, #tpu.memory_space<vmem>>, %arg4: memref<8x128xf32, #tpu.memory_space<vmem>>, %arg5: memref<128x128xf32, #tpu.memory_space<vmem>>, %arg6: memref<128x128xf32, #tpu.memory_space<vmem>>, %arg7: memref<8x2x128xf32, #tpu.memory_space<vmem>>, %arg8: memref<8x128xf32, #tpu.memory_space<vmem>>) attributes {dimension_semantics = [#tpu.dimension_semantics<parallel>, #tpu.dimension_semantics<parallel>, #tpu.dimension_semantics<arbitrary>], iteration_bounds = array<i64: 1, 1, 1>, scalar_prefetch = 0 : i64, scratch_operands = 1 : i64, tpu.core_type = #tpu.core_type<tc>, window_params = [{transform_indices = @transform_0, window_bounds = array<i64: 8, 128>}, {transform_indices = @transform_1, window_bounds = array<i64: 8, 128>}, {transform_indices = @transform_2, window_bounds = array<i64: 128, 128>}, {transform_indices = @transform_3, window_bounds = array<i64: 128, 128>}, {transform_indices = @transform_4, window_bounds = array<i64: 8, 2, 128>}]} {
    %c0_i32 = arith.constant 0 : i32
    %0 = arith.cmpi eq, %arg2, %c0_i32 : i32
    %1 = arith.extui %0 : i1 to i32
    %c0_i32_0 = arith.constant 0 : i32
    %2 = arith.cmpi ne, %1, %c0_i32_0 : i32
    scf.if %2 {
      %cst_19 = arith.constant 0.000000e+00 : f32
      %18 = vector.broadcast %cst_19 : f32 to vector<8x128xf32>
      %c0_20 = arith.constant 0 : index
      %c0_21 = arith.constant 0 : index
      %19 = vector.load %arg8[%c0_20, %c0_21] : memref<8x128xf32, #tpu.memory_space<vmem>>, vector<8x128xf32>
      tpu.vector_store %arg8[%c0_20, %c0_21], %18 {strides = array<i32>} : memref<8x128xf32, #tpu.memory_space<vmem>>, vector<8x128xf32>,
    } else {
    }
    %c0 = arith.constant 0 : index
    %c0_1 = arith.constant 0 : index
    %3 = vector.load %arg8[%c0, %c0_1] : memref<8x128xf32, #tpu.memory_space<vmem>>, vector<8x128xf32>
    %c0_2 = arith.constant 0 : index
    %c0_3 = arith.constant 0 : index
    %4 = vector.load %arg3[%c0_2, %c0_3] : memref<8x128xf32, #tpu.memory_space<vmem>>, vector<8x128xf32>
    %c0_4 = arith.constant 0 : index
    %c0_5 = arith.constant 0 : index
    %5 = vector.load %arg5[%c0_4, %c0_5] : memref<128x128xf32, #tpu.memory_space<vmem>>, vector<128x128xf32>
    %cst = arith.constant dense<0.000000e+00> : vector<8x128xf32>
    %6 = tpu.matmul %4, %5, %cst {dimension_numbers = #tpu.dot_dimension_numbers<[1], [0], [0], [1], [0, 0, 1, 1], [], []>} : vector<8x128xf32>, vector<128x128xf32>, vector<8x128xf32> -> vector<8x128xf32>
    %7 = arith.addf %3, %6 : vector<8x128xf32>
    %c0_6 = arith.constant 0 : index
    %c0_7 = arith.constant 0 : index
    %8 = vector.load %arg8[%c0_6, %c0_7] : memref<8x128xf32, #tpu.memory_space<vmem>>, vector<8x128xf32>
    tpu.vector_store %arg8[%c0_6, %c0_7], %7 {strides = array<i32>} : memref<8x128xf32, #tpu.memory_space<vmem>>, vector<8x128xf32>,
    %c0_8 = arith.constant 0 : index
    %c0_9 = arith.constant 0 : index
    %9 = vector.load %arg8[%c0_8, %c0_9] : memref<8x128xf32, #tpu.memory_space<vmem>>, vector<8x128xf32>
    %c0_10 = arith.constant 0 : index
    %c0_11 = arith.constant 0 : index
    %10 = vector.load %arg4[%c0_10, %c0_11] : memref<8x128xf32, #tpu.memory_space<vmem>>, vector<8x128xf32>
    %c0_12 = arith.constant 0 : index
    %c0_13 = arith.constant 0 : index
    %11 = vector.load %arg6[%c0_12, %c0_13] : memref<128x128xf32, #tpu.memory_space<vmem>>, vector<128x128xf32>
    %cst_14 = arith.constant dense<0.000000e+00> : vector<8x128xf32>
    %12 = tpu.matmul %10, %11, %cst_14 {dimension_numbers = #tpu.dot_dimension_numbers<[1], [0], [0], [1], [0, 0, 1, 1], [], []>} : vector<8x128xf32>, vector<128x128xf32>, vector<8x128xf32> -> vector<8x128xf32>
    %13 = arith.subf %9, %12 : vector<8x128xf32>
    %c0_15 = arith.constant 0 : index
    %c0_16 = arith.constant 0 : index
    %14 = vector.load %arg8[%c0_15, %c0_16] : memref<8x128xf32, #tpu.memory_space<vmem>>, vector<8x128xf32>
    tpu.vector_store %arg8[%c0_15, %c0_16], %13 {strides = array<i32>} : memref<8x128xf32, #tpu.memory_space<vmem>>, vector<8x128xf32>,
    %c0_i32_17 = arith.constant 0 : i32
    %15 = arith.cmpi eq, %arg2, %c0_i32_17 : i32
    %16 = arith.extui %15 : i1 to i32
    %c0_i32_18 = arith.constant 0 : i32
    %17 = arith.cmpi ne, %16, %c0_i32_18 : i32
    scf.if %17 {
      %c0_19 = arith.constant 0 : index
      %c0_20 = arith.constant 0 : index
      %18 = vector.load %arg8[%c0_19, %c0_20] : memref<8x128xf32, #tpu.memory_space<vmem>>, vector<8x128xf32>
      %c0_21 = arith.constant 0 : index
      %c0_22 = arith.constant 0 : index
      %c0_23 = arith.constant 0 : index
      %19 = vector.load %arg7[%c0_21, %c0_22, %c0_23] : memref<8x2x128xf32, #tpu.memory_space<vmem>>, vector<8x1x128xf32>
      %20 = vector.shape_cast %19 : vector<8x1x128xf32> to vector<8x128xf32>
      %21 = vector.shape_cast %18 : vector<8x128xf32> to vector<8x1x128xf32>
      tpu.vector_store %arg7[%c0_21, %c0_22, %c0_23], %21 {strides = array<i32>} : memref<8x2x128xf32, #tpu.memory_space<vmem>>, vector<8x1x128xf32>,
      %c0_24 = arith.constant 0 : index
      %c1 = arith.constant 1 : index
      %c0_25 = arith.constant 0 : index
      %22 = vector.load %arg7[%c0_24, %c1, %c0_25] : memref<8x2x128xf32, #tpu.memory_space<vmem>>, vector<8x1x128xf32>
      %23 = vector.shape_cast %22 : vector<8x1x128xf32> to vector<8x128xf32>
      %24 = vector.shape_cast %18 : vector<8x128xf32> to vector<8x1x128xf32>
      tpu.vector_store %arg7[%c0_24, %c1, %c0_25], %24 {strides = array<i32>} : memref<8x2x128xf32, #tpu.memory_space<vmem>>, vector<8x1x128xf32>,
    } else {
    }
    return
  }
  func.func @transform_0(%arg0: i32, %arg1: i32, %arg2: i32) -> (i32, i32) {
    %c0_i32 = arith.constant 0 : i32
    return %arg0, %arg2 : i32, i32
  }
  func.func @transform_1(%arg0: i32, %arg1: i32, %arg2: i32) -> (i32, i32) {
    %c1_i32 = arith.constant 1 : i32
    %0 = arith.addi %arg2, %c1_i32 : i32
    %c0_i32 = arith.constant 0 : i32
    return %arg0, %0 : i32, i32
  }
  func.func @transform_2(%arg0: i32, %arg1: i32, %arg2: i32) -> (i32, i32) {
    %c0_i32 = arith.constant 0 : i32
    return %arg2, %arg1 : i32, i32
  }
  func.func @transform_3(%arg0: i32, %arg1: i32, %arg2: i32) -> (i32, i32) {
    %c0_i32 = arith.constant 0 : i32
    return %arg2, %arg1 : i32, i32
  }
  func.func @transform_4(%arg0: i32, %arg1: i32, %arg2: i32) -> (i32, i32, i32) {
    %c0_i32 = arith.constant 0 : i32
    %c0_i32_0 = arith.constant 0 : i32
    return %arg0, %c0_i32, %arg1 : i32, i32, i32
  }
}

</mosaic_0001>

<bundles_post_ra>
// kernel: rcv_linear.1
= control target key start
LH: loop header
LB: loop body
LE: loop exit
PB: predicated region body
PF: predicated region fallthrough
CT: control target
= control target key end

     0   :  { %v423_v0 = vmov 0.0   ;;  %vm424_vm0 = vmmov 0   ;;  %v425_v35 = vmov 1966171168   ;;  %v228_v37 = vlaneseq  ;;  %s635_s2 = inlined_call_operand.vmem [shape: f32[128,128], index: 2, kind: input, shape index: {}]   ;;  %s636_s3 = inlined_call_operand.vmem [shape: f32[128,128], index: 3, kind: input, shape index: {}]   ;;  %s637_s0 = inlined_call_operand.vmem [shape: f32[8,256], index: 0, kind: input, shape index: {}, may-alias: {0,1}]   ;;  %s638_s1 = inlined_call_operand.vmem [shape: f32[8,256], index: 1, kind: input, shape index: {}, may-alias: {0,1}]   ;;  %s639_s4 = inlined_call_operand.vmem [shape: f32[8,2,128], index: 4, kind: output, shape index: {}]  }
   0x1   :  { %350 = vmatprep.subr.mxu0 %v423_v0  ;;  %385 = vmatprep.subr.mxu1 %v423_v0  ;;  %v56_v1 = vld [vmem:[%s635_s2 + $0x78] sm:$0xff]  ;;  %v55_v3 = vld [vmem:[%s635_s2 + $0x70] sm:$0xff]  ;;  %v54_v5 = vld [vmem:[%s635_s2 + $0x68] sm:$0xff]  ;;  %v226_v36 = vunpack.c.l.s4 %v425_v35 }
   0x2   :  { %v146_v2 = vld [vmem:[%s636_s3 + $0x78] sm:$0xff]  ;;  %351 = vmatpush3.msra.mxu0 %v56_v1  ;;  %v145_v4 = vld [vmem:[%s636_s3 + $0x70] sm:$0xff]  ;;  %v144_v6 = vld [vmem:[%s636_s3 + $0x68] sm:$0xff]  ;;  %382 = vmatprep.mubr.msk.f32.mxu0 %vm424_vm0, %v423_v0  ;;  %v229_v39 = vshrl.u32 %v228_v37, 7 }
   0x3   :  { %386 = vmatpush3.msra.mxu1 %v146_v2  ;;  %352 = vmatprep.subr.mxu0 %v423_v0  ;;  %v53_v7 = vld [vmem:[%s635_s2 + $0x60] sm:$0xff]  ;;  %v52_v9 = vld [vmem:[%s635_s2 + $0x58] sm:$0xff]  ;;  %v51_v11 = vld [vmem:[%s635_s2 + $0x50] sm:$0xff]  ;;  %v227_v38 = vunpack.c.0.s8 %v226_v36 }
   0x4   :  { %387 = vmatprep.subr.mxu1 %v423_v0  ;;  %353 = vmatpush3.msra.mxu0 %v55_v3  ;;  %v143_v8 = vld [vmem:[%s636_s3 + $0x60] sm:$0xff]  ;;  %v142_v10 = vld [vmem:[%s636_s3 + $0x58] sm:$0xff]  ;;  %v141_v12 = vld [vmem:[%s636_s3 + $0x50] sm:$0xff] }
   0x5   :  { %388 = vmatpush3.msra.mxu1 %v145_v4  ;;  %354 = vmatprep.subr.mxu0 %v423_v0  ;;  %v50_v13 = vld [vmem:[%s635_s2 + $0x48] sm:$0xff]  ;;  %v49_v15 = vld [vmem:[%s635_s2 + $0x40] sm:$0xff]  ;;  %v48_v17 = vld [vmem:[%s635_s2 + $0x38] sm:$0xff]  ;;  %v230_v40 = vsub.s32 %v227_v38, %v229_v39 }
   0x6   :  { %389 = vmatprep.subr.mxu1 %v423_v0  ;;  %355 = vmatpush3.msra.mxu0 %v54_v5  ;;  %v140_v14 = vld [vmem:[%s636_s3 + $0x48] sm:$0xff]  ;;  %v139_v16 = vld [vmem:[%s636_s3 + $0x40] sm:$0xff]  ;;  %v138_v18 = vld [vmem:[%s636_s3 + $0x38] sm:$0xff] }
   0x7   :  { %390 = vmatpush3.msra.mxu1 %v144_v6  ;;  %356 = vmatprep.subr.mxu0 %v423_v0  ;;  %v47_v19 = vld [vmem:[%s635_s2 + $0x30] sm:$0xff]  ;;  %v46_v21 = vld [vmem:[%s635_s2 + $0x28] sm:$0xff]  ;;  %v45_v23 = vld [vmem:[%s635_s2 + $0x20] sm:$0xff] }
   0x8   :  { %391 = vmatprep.subr.mxu1 %v423_v0  ;;  %357 = vmatpush3.msra.mxu0 %v53_v7  ;;  %v137_v20 = vld [vmem:[%s636_s3 + $0x30] sm:$0xff]  ;;  %v136_v22 = vld [vmem:[%s636_s3 + $0x28] sm:$0xff]  ;;  %v135_v24 = vld [vmem:[%s636_s3 + $0x20] sm:$0xff] }
   0x9   :  { %392 = vmatpush3.msra.mxu1 %v143_v8  ;;  %358 = vmatprep.subr.mxu0 %v423_v0  ;;  %v44_v25 = vld [vmem:[%s635_s2 + $0x18] sm:$0xff]  ;;  %v43_v27 = vld [vmem:[%s635_s2 + $0x10] sm:$0xff]  ;;  %v42_v29 = vld [vmem:[%s635_s2 + $0x8] sm:$0xff] }
   0xa   :  { %393 = vmatprep.subr.mxu1 %v423_v0  ;;  %359 = vmatpush3.msra.mxu0 %v52_v9  ;;  %v134_v26 = vld [vmem:[%s636_s3 + $0x18] sm:$0xff]  ;;  %v133_v28 = vld [vmem:[%s636_s3 + $0x10] sm:$0xff]  ;;  %v132_v30 = vld [vmem:[%s636_s3 + $0x8] sm:$0xff] }
   0xb   :  { %394 = vmatpush3.msra.mxu1 %v142_v10  ;;  %360 = vmatprep.subr.mxu0 %v423_v0  ;;  %v41_v31 = vld [vmem:[%s635_s2] sm:$0xff]  ;;  %v307_v34 = vld [vmem:[%s638_s1 + $0x8] sm:$0xff] }
   0xc   :  { %395 = vmatprep.subr.mxu1 %v423_v0  ;;  %361 = vmatpush3.msra.mxu0 %v51_v11  ;;  %v131_v32 = vld [vmem:[%s636_s3] sm:$0xff] }
   0xd   :  { %396 = vmatpush3.msra.mxu1 %v141_v12  ;;  %362 = vmatprep.subr.mxu0 %v423_v0  ;;  %v40_v33 = vld [vmem:[%s637_s0] sm:$0xff] }
   0xe   :  { %397 = vmatprep.subr.mxu1 %v423_v0  ;;  %363 = vmatpush3.msra.mxu0 %v50_v13 }
   0xf   :  { %398 = vmatpush3.msra.mxu1 %v140_v14  ;;  %364 = vmatprep.subr.mxu0 %v423_v0 }
  0x10   :  { %399 = vmatprep.subr.mxu1 %v423_v0  ;;  %365 = vmatpush3.msra.mxu0 %v49_v15 }
  0x11   :  { %400 = vmatpush3.msra.mxu1 %v139_v16  ;;  %366 = vmatprep.subr.mxu0 %v423_v0 }
  0x12   :  { %401 = vmatprep.subr.mxu1 %v423_v0  ;;  %367 = vmatpush3.msra.mxu0 %v48_v17 }
  0x13   :  { %402 = vmatpush3.msra.mxu1 %v138_v18  ;;  %368 = vmatprep.subr.mxu0 %v423_v0 }
  0x14   :  { %403 = vmatprep.subr.mxu1 %v423_v0  ;;  %369 = vmatpush3.msra.mxu0 %v47_v19 }
  0x15   :  { %404 = vmatpush3.msra.mxu1 %v137_v20  ;;  %370 = vmatprep.subr.mxu0 %v423_v0 }
  0x16   :  { %405 = vmatprep.subr.mxu1 %v423_v0  ;;  %371 = vmatpush3.msra.mxu0 %v46_v21 }
  0x17   :  { %406 = vmatpush3.msra.mxu1 %v136_v22  ;;  %372 = vmatprep.subr.mxu0 %v423_v0 }
  0x18   :  { %407 = vmatprep.subr.mxu1 %v423_v0  ;;  %373 = vmatpush3.msra.mxu0 %v45_v23 }
  0x19   :  { %408 = vmatpush3.msra.mxu1 %v135_v24  ;;  %374 = vmatprep.subr.mxu0 %v423_v0 }
  0x1a   :  { %409 = vmatprep.subr.mxu1 %v423_v0  ;;  %375 = vmatpush3.msra.mxu0 %v44_v25 }
  0x1b   :  { %410 = vmatpush3.msra.mxu1 %v134_v26  ;;  %376 = vmatprep.subr.mxu0 %v423_v0 }
  0x1c   :  { %411 = vmatprep.subr.mxu1 %v423_v0  ;;  %377 = vmatpush3.msra.mxu0 %v43_v27 }
  0x1d   :  { %412 = vmatpush3.msra.mxu1 %v133_v28  ;;  %378 = vmatprep.subr.mxu0 %v423_v0 }
  0x1e   :  { %413 = vmatprep.subr.mxu1 %v423_v0  ;;  %379 = vmatpush3.msra.mxu0 %v42_v29 }
  0x1f   :  { %414 = vmatpush3.msra.mxu1 %v132_v30  ;;  %380 = vmatprep.subr.mxu0 %v423_v0 }
  0x20   :  { %415 = vmatprep.subr.mxu1 %v423_v0  ;;  %381 = vmatpush3.msra.mxu0 %v41_v31 }
  0x21   :  { %416 = vmatpush3.msra.mxu1 %v131_v32  ;;  %417 = vmatprep.mubr.msk.f32.mxu1 %vm424_vm0, %v423_v0 }
  0x22   :  { %383 = vmatmul.mubr.f32.vlgmr.msra.gmra.mxu0 %v40_v33  ;;  %418 = vmatmul.mubr.f32.vlgmr.msra.gmra.mxu1 %v307_v34 }
  0xe2   :  { %v123_v41 = vpop.f32.mrf.mxu0  ;;  %v213_v42 = vpop.f32.mrf.mxu1 }
  0xe3   :  { %v217_v43 = vsub.f32 %v123_v41, %v213_v42 }
  0xe4   :  { %v384_v44 = vpop.f32.mrf.mxu0  ;;  %v419_v45 = vpop.f32.mrf.mxu1 }
  0xe5   :  { %v224_v46 = vcombine.high %v217_v43, %v217_v43  ;;  %v231_v47 = vrot.slane %v217_v43, %v230_v40 }
  0xe7   :  { %v238_v48 = vrot.slane %v224_v46, %v230_v40  ;;  %v239_v49 = vcombine.high %v231_v47, %v231_v47  ;;  %v247_v50 = vrot.slane %v231_v47, %v230_v40  ;;  %308 = vst.sshfl [vmem:[%s639_s4] sm:$0x1 pattern:$0x73625140] %v231_v47 }
  0xe8   :  { %312 = vst.sshfl [vmem:[%s639_s4 + $0x1] sm:$0x1 pattern:$0x73625140] %v231_v47 }
  0xe9   :  { %v240_v51 = vcombine.high %v238_v48, %v238_v48  ;;  %v254_v52 = vrot.slane %v238_v48, %v230_v40  ;;  %v261_v53 = vrot.slane %v239_v49, %v230_v40  ;;  %v269_v54 = vcombine.high %v247_v50, %v247_v50  ;;  %309 = vst.sshfl [vmem:[%s639_s4 + $0x2] sm:$0x1 pattern:$0x73625140] %v239_v49 }
  0xea   :  { %310 = vst.sshfl [vmem:[%s639_s4 + $0x8] sm:$0x1 pattern:$0x73625140] %v238_v48 }
  0xeb   :  { %313 = vst.sshfl [vmem:[%s639_s4 + $0x3] sm:$0x1 pattern:$0x73625140] %v239_v49  ;;  %v268_v55 = vrot.slane %v240_v51, %v230_v40  ;;  %v270_v56 = vcombine.high %v254_v52, %v254_v52  ;;  %v271_v57 = vcombine.high %v261_v53, %v261_v53  ;;  %283 = vst [vmem:[%s639_s4 + $0x4] sm:$0x1] %v269_v54 }
  0xec   :  { %314 = vst.sshfl [vmem:[%s639_s4 + $0x9] sm:$0x1 pattern:$0x73625140] %v238_v48  ;;  %291 = vst [vmem:[%s639_s4 + $0x5] sm:$0x1] %v269_v54 }
  0xed   :  { %311 = vst.sshfl [vmem:[%s639_s4 + $0xa] sm:$0x1 pattern:$0x73625140] %v240_v51  ;;  %v272_v58 = vcombine.high %v268_v55, %v268_v55  ;;  %284 = vst [vmem:[%s639_s4 + $0x6] sm:$0x1] %v271_v57 }
  0xee   :  { %315 = vst.sshfl [vmem:[%s639_s4 + $0xb] sm:$0x1 pattern:$0x73625140] %v240_v51  ;;  %287 = vst [vmem:[%s639_s4 + $0xc] sm:$0x1] %v270_v56 }
  0xef   :  { %292 = vst [vmem:[%s639_s4 + $0x7] sm:$0x1] %v271_v57  ;;  %295 = vst [vmem:[%s639_s4 + $0xd] sm:$0x1] %v270_v56 }
  0xf0   :  { %288 = vst [vmem:[%s639_s4 + $0xe] sm:$0x1] %v272_v58  ;;  %296 = vst [vmem:[%s639_s4 + $0xf] sm:$0x1] %v272_v58 }

</bundles_post_ra>
